<compile_context>
chip_gen: v7x
topology: tpu7x:2x2x1
jax: 0.10.0
libtpu: 0.0.40
codegen_flags: <defaults>
</compile_context>

<pallas_src>
import jax
import jax.numpy as jnp
from jax.experimental import pallas as pl
from jax.experimental.pallas import tpu as pltpu

BN_EPS = 1e-5
IP_NOISE_STD = 0.2    # InnerProductLayer noise_std (folded into wip_n host-side)
NET_NOISE_STD = 1.0   # Net noise_std (== 1.0 -> no in-kernel scale needed)
NOISE_PAD = 128       # eps contracting dim padded 100 -> 128 (lane/sublane aligned)
OUT_PAD = 128         # lane-dense output slab width


def _batchnorm_train(z, gamma, beta):
    # PyTorch BatchNorm1d training-mode forward (biased batch variance),
    # single-pass stats: var = E[z^2] - mean^2.
    inv_n = 1.0 / z.shape[0]
    mu = jnp.sum(z, axis=0, keepdims=True) * inv_n
    ez2 = jnp.sum(z * z, axis=0, keepdims=True) * inv_n
    var = jnp.maximum(ez2 - mu * mu, 0.0)
    return (z - mu) * jax.lax.rsqrt(var + BN_EPS) * gamma + beta


def mynet_kernel(x_ref, ipn_ref, eps_ref,
                 wipx_ref, wipn_ref,
                 w1x_ref, w1n_ref, w1e_ref, g1_ref, be1_ref,
                 w2_ref, g2_ref, be2_ref,
                 w3_ref, b3_ref, o_ref):
    # --- InnerProductLayer: VPU multiply + lane reduce (no N=1 MXU matmuls) ---
    # wipn already carries IP_NOISE_STD, so ipn_ref holds unscaled N(0,1) noise.
    xr = jnp.sum(x_ref[...] * wipx_ref[...], axis=1, keepdims=True)    # (B,1)
    nr = jnp.sum(ipn_ref[...] * wipn_ref[...], axis=1, keepdims=True)  # (B,1)

    # --- Net layer 1: concat([xr, nr, eps]) @ W1, W1 pre-split row-wise.
    #     b1 omitted: cancelled exactly by training-mode BN. Padded eps rows
    #     of W1_eps are zero, so the K=100->128 pad is a no-op. ---
    z = (xr * w1x_ref[...]
         + nr * w1n_ref[...]
         + jnp.dot(eps_ref[...], w1e_ref[...], preferred_element_type=jnp.float32))
    z = _batchnorm_train(z, g1_ref[...], be1_ref[...])
    z = jnp.maximum(z, 0.0)

    # --- Net layer 2 (b2 omitted: cancelled by BN) ---
    z = jnp.dot(z, w2_ref[...], preferred_element_type=jnp.float32)
    z = _batchnorm_train(z, g2_ref[...], be2_ref[...])
    z = jnp.maximum(z, 0.0)

    # --- Output linear (lane-dense, 128 padded cols) + out_act='relu' ---
    z = jnp.dot(z, w3_ref[...], preferred_element_type=jnp.float32) + b3_ref[...]
    o_ref[...] = jnp.maximum(z, 0.0)


def mynet_forward(x, key, params):
    """x: (B, in_dim) float32, key: jax PRNG key. Returns (B, out_dim) float32."""
    B, in_dim = x.shape
    out_dim = params["out_dim"]

    # Fresh Gaussian noise per forward call, drawn host-side (interpret-safe).
    k_ip, k_eps = jax.random.split(key)
    ip_noise = jax.random.normal(k_ip, (B, in_dim), jnp.float32)    # 0.2 folded into wip_n
    eps = jax.random.normal(k_eps, (B, NOISE_PAD), jnp.float32)     # cols >= 100 hit zero rows

    inputs = (
        x,
        ip_noise,
        eps,
        params["wip_x"],                                   # (1, in_dim)
        params["wip_n"],                                   # (1, in_dim), 0.2*w_ip
        params["w1_x"], params["w1_n"], params["W1_eps"],  # (1,H), (1,H), (128,H)
        params["g1"], params["be1"],                       # (1,H) each
        params["W2"], params["g2"], params["be2"],
        params["W3p"], params["b3p"],                      # (H,128), (1,128)
    )

    def full_spec(shape):
        nd = len(shape)
        return pl.BlockSpec(shape, lambda *_: (0,) * nd)

    out = pl.pallas_call(
        mynet_kernel,
        out_shape=jax.ShapeDtypeStruct((B, OUT_PAD), jnp.float32),
        grid=(1,),
        in_specs=[full_spec(a.shape) for a in inputs],
        out_specs=full_spec((B, OUT_PAD)),
        compiler_params=pltpu.CompilerParams(
            dimension_semantics=("arbitrary",)),
    )(*inputs)

    return out[:, :out_dim]


def init_params(key, in_dim, hidden_dim, out_dim, noise_dim):
    """Deterministic parameter init (PyTorch-style uniform +/- 1/sqrt(fan_in))."""
    ks = jax.random.split(key, 4)

    def lin(k, fan_in, fan_out):
        bound = 1.0 / jnp.sqrt(float(fan_in))
        kw, kb = jax.random.split(k)
        W = jax.random.uniform(kw, (fan_in, fan_out), jnp.float32, -bound, bound)
        b = jax.random.uniform(kb, (1, fan_out), jnp.float32, -bound, bound)
        return W, b

    # InnerProductLayer weight vector: fixed 1.0 + learnable a_true[1:] = 0.
    wip = jnp.concatenate(
        [jnp.ones((1,), jnp.float32), jnp.zeros((in_dim - 1,), jnp.float32)])
    wip_x = wip.reshape(1, in_dim)
    wip_n = (IP_NOISE_STD * wip).reshape(1, in_dim)   # noise_std folded in

    net_in = 2 + noise_dim  # Net block input: (x_red, noise_red) + eps channels
    W1, _b1 = lin(ks[0], net_in, hidden_dim)   # b1 cancelled by training-mode BN
    W2, _b2 = lin(ks[1], hidden_dim, hidden_dim)
    W3, b3 = lin(ks[2], hidden_dim, out_dim)

    # eps weight rows zero-padded 100 -> 128 (padded rows contribute nothing).
    W1_eps = jnp.zeros((NOISE_PAD, hidden_dim), jnp.float32).at[:noise_dim, :].set(W1[2:, :])
    # Lane-dense output: pad W3/b3 to 128 columns with zeros.
    W3p = jnp.zeros((hidden_dim, OUT_PAD), jnp.float32).at[:, :out_dim].set(W3)
    b3p = jnp.zeros((1, OUT_PAD), jnp.float32).at[:, :out_dim].set(b3)

    return {
        "out_dim": out_dim,
        "wip_x": wip_x,
        "wip_n": wip_n,
        "w1_x": W1[0:1, :],          # row for x_reduced
        "w1_n": W1[1:2, :],          # row for noise_reduced
        "W1_eps": W1_eps,            # padded rows for the Gaussian noise channels
        "g1": jnp.ones((1, hidden_dim), jnp.float32),    # BN1 gamma
        "be1": jnp.zeros((1, hidden_dim), jnp.float32),  # BN1 beta
        "W2": W2,
        "g2": jnp.ones((1, hidden_dim), jnp.float32),
        "be2": jnp.zeros((1, hidden_dim), jnp.float32),
        "W3p": W3p, "b3p": b3p,
    }


if __name__ == "__main__":
    B, IN_DIM, HIDDEN, OUT_DIM = 16, 8, 32, 4
    NOISE_DIM = 100  # Net() default, MyNet does not override it

    key = jax.random.PRNGKey(0)
    k_x, k_p, k_fwd = jax.random.split(key, 3)

    x = jax.random.normal(k_x, (B, IN_DIM), jnp.float32)
    params = init_params(k_p, IN_DIM, HIDDEN, OUT_DIM, NOISE_DIM)

    # Fresh noise per forward call <=> a new key per call (fixed here for determinism).
    y = mynet_forward(x, k_fwd, params)
    y = jax.block_until_ready(y)

    assert y.shape == (B, OUT_DIM) and y.dtype == jnp.float32
    assert bool(jnp.all(jnp.isfinite(y)))
    print("KERNEL_OK")
</pallas_src>

<mosaic_0001>
module attributes {stable_mosaic.version = 11 : i64} {
  func.func @mynet_kernel(%arg0: i32, %arg1: memref<16x8xf32, #tpu.memory_space<vmem>>, %arg2: memref<16x8xf32, #tpu.memory_space<vmem>>, %arg3: memref<16x128xf32, #tpu.memory_space<vmem>>, %arg4: memref<1x8xf32, #tpu.memory_space<vmem>>, %arg5: memref<1x8xf32, #tpu.memory_space<vmem>>, %arg6: memref<1x32xf32, #tpu.memory_space<vmem>>, %arg7: memref<1x32xf32, #tpu.memory_space<vmem>>, %arg8: memref<128x32xf32, #tpu.memory_space<vmem>>, %arg9: memref<1x32xf32, #tpu.memory_space<vmem>>, %arg10: memref<1x32xf32, #tpu.memory_space<vmem>>, %arg11: memref<32x32xf32, #tpu.memory_space<vmem>>, %arg12: memref<1x32xf32, #tpu.memory_space<vmem>>, %arg13: memref<1x32xf32, #tpu.memory_space<vmem>>, %arg14: memref<32x128xf32, #tpu.memory_space<vmem>>, %arg15: memref<1x128xf32, #tpu.memory_space<vmem>>, %arg16: memref<16x128xf32, #tpu.memory_space<vmem>>) attributes {dimension_semantics = [#tpu.dimension_semantics<arbitrary>], iteration_bounds = array<i64: 1>, scalar_prefetch = 0 : i64, scratch_operands = 0 : i64, tpu.core_type = #tpu.core_type<tc>, window_params = [{pipeline_mode = #tpu.pipeline_mode<synchronous>, transform_indices = @transform_0, window_bounds = array<i64: 16, 8>}, {pipeline_mode = #tpu.pipeline_mode<synchronous>, transform_indices = @transform_1, window_bounds = array<i64: 16, 8>}, {pipeline_mode = #tpu.pipeline_mode<synchronous>, transform_indices = @transform_2, window_bounds = array<i64: 16, 128>}, {pipeline_mode = #tpu.pipeline_mode<synchronous>, transform_indices = @transform_3, window_bounds = array<i64: 1, 8>}, {pipeline_mode = #tpu.pipeline_mode<synchronous>, transform_indices = @transform_4, window_bounds = array<i64: 1, 8>}, {pipeline_mode = #tpu.pipeline_mode<synchronous>, transform_indices = @transform_5, window_bounds = array<i64: 1, 32>}, {pipeline_mode = #tpu.pipeline_mode<synchronous>, transform_indices = @transform_6, window_bounds = array<i64: 1, 32>}, {pipeline_mode = #tpu.pipeline_mode<synchronous>, transform_indices = @transform_7, window_bounds = array<i64: 128, 32>}, {pipeline_mode = #tpu.pipeline_mode<synchronous>, transform_indices = @transform_8, window_bounds = array<i64: 1, 32>}, {pipeline_mode = #tpu.pipeline_mode<synchronous>, transform_indices = @transform_9, window_bounds = array<i64: 1, 32>}, {pipeline_mode = #tpu.pipeline_mode<synchronous>, transform_indices = @transform_10, window_bounds = array<i64: 32, 32>}, {pipeline_mode = #tpu.pipeline_mode<synchronous>, transform_indices = @transform_11, window_bounds = array<i64: 1, 32>}, {pipeline_mode = #tpu.pipeline_mode<synchronous>, transform_indices = @transform_12, window_bounds = array<i64: 1, 32>}, {pipeline_mode = #tpu.pipeline_mode<synchronous>, transform_indices = @transform_13, window_bounds = array<i64: 32, 128>}, {pipeline_mode = #tpu.pipeline_mode<synchronous>, transform_indices = @transform_14, window_bounds = array<i64: 1, 128>}, {pipeline_mode = #tpu.pipeline_mode<synchronous>, transform_indices = @transform_15, window_bounds = array<i64: 16, 128>}]} {
    %c0 = arith.constant 0 : index
    %c0_0 = arith.constant 0 : index
    %0 = vector.load %arg1[%c0, %c0_0] : memref<16x8xf32, #tpu.memory_space<vmem>>, vector<16x8xf32>
    %c0_1 = arith.constant 0 : index
    %c0_2 = arith.constant 0 : index
    %1 = vector.load %arg4[%c0_1, %c0_2] : memref<1x8xf32, #tpu.memory_space<vmem>>, vector<1x8xf32>
    %2 = vector.broadcast %1 : vector<1x8xf32> to vector<16x8xf32>
    %3 = arith.mulf %0, %2 : vector<16x8xf32>
    %cst = arith.constant dense<0.000000e+00> : vector<16xf32>
    %4 = vector.multi_reduction <add>, %3, %cst [1] : vector<16x8xf32> to vector<16xf32>
    %5 = vector.shape_cast %4 : vector<16xf32> to vector<16x1xf32>
    %c0_3 = arith.constant 0 : index
    %c0_4 = arith.constant 0 : index
    %6 = vector.load %arg2[%c0_3, %c0_4] : memref<16x8xf32, #tpu.memory_space<vmem>>, vector<16x8xf32>
    %c0_5 = arith.constant 0 : index
    %c0_6 = arith.constant 0 : index
    %7 = vector.load %arg5[%c0_5, %c0_6] : memref<1x8xf32, #tpu.memory_space<vmem>>, vector<1x8xf32>
    %8 = vector.broadcast %7 : vector<1x8xf32> to vector<16x8xf32>
    %9 = arith.mulf %6, %8 : vector<16x8xf32>
    %cst_7 = arith.constant dense<0.000000e+00> : vector<16xf32>
    %10 = vector.multi_reduction <add>, %9, %cst_7 [1] : vector<16x8xf32> to vector<16xf32>
    %11 = vector.shape_cast %10 : vector<16xf32> to vector<16x1xf32>
    %c0_8 = arith.constant 0 : index
    %c0_9 = arith.constant 0 : index
    %12 = vector.load %arg6[%c0_8, %c0_9] : memref<1x32xf32, #tpu.memory_space<vmem>>, vector<1x32xf32>
    %13 = vector.broadcast %5 : vector<16x1xf32> to vector<16x32xf32>
    %14 = vector.broadcast %12 : vector<1x32xf32> to vector<16x32xf32>
    %15 = arith.mulf %13, %14 : vector<16x32xf32>
    %c0_10 = arith.constant 0 : index
    %c0_11 = arith.constant 0 : index
    %16 = vector.load %arg7[%c0_10, %c0_11] : memref<1x32xf32, #tpu.memory_space<vmem>>, vector<1x32xf32>
    %17 = vector.broadcast %11 : vector<16x1xf32> to vector<16x32xf32>
    %18 = vector.broadcast %16 : vector<1x32xf32> to vector<16x32xf32>
    %19 = arith.mulf %17, %18 : vector<16x32xf32>
    %20 = arith.addf %15, %19 : vector<16x32xf32>
    %c0_12 = arith.constant 0 : index
    %c0_13 = arith.constant 0 : index
    %21 = vector.load %arg3[%c0_12, %c0_13] : memref<16x128xf32, #tpu.memory_space<vmem>>, vector<16x128xf32>
    %c0_14 = arith.constant 0 : index
    %c0_15 = arith.constant 0 : index
    %22 = vector.load %arg8[%c0_14, %c0_15] : memref<128x32xf32, #tpu.memory_space<vmem>>, vector<128x32xf32>
    %cst_16 = arith.constant dense<0.000000e+00> : vector<16x32xf32>
    %23 = tpu.matmul %21, %22, %cst_16 {dimension_numbers = #tpu.dot_dimension_numbers<[1], [0], [0], [1], [0, 0, 1, 1], [], []>} : vector<16x128xf32>, vector<128x32xf32>, vector<16x32xf32> -> vector<16x32xf32>
    %24 = arith.addf %20, %23 : vector<16x32xf32>
    %c0_17 = arith.constant 0 : index
    %c0_18 = arith.constant 0 : index
    %25 = vector.load %arg9[%c0_17, %c0_18] : memref<1x32xf32, #tpu.memory_space<vmem>>, vector<1x32xf32>
    %c0_19 = arith.constant 0 : index
    %c0_20 = arith.constant 0 : index
    %26 = vector.load %arg10[%c0_19, %c0_20] : memref<1x32xf32, #tpu.memory_space<vmem>>, vector<1x32xf32>
    %cst_21 = arith.constant dense<0.000000e+00> : vector<32xf32>
    %27 = vector.multi_reduction <add>, %24, %cst_21 [0] : vector<16x32xf32> to vector<32xf32>
    %28 = vector.shape_cast %27 : vector<32xf32> to vector<1x32xf32>
    %cst_22 = arith.constant 6.250000e-02 : f32
    %29 = vector.broadcast %cst_22 : f32 to vector<1x32xf32>
    %30 = arith.mulf %28, %29 : vector<1x32xf32>
    %31 = arith.mulf %24, %24 : vector<16x32xf32>
    %cst_23 = arith.constant dense<0.000000e+00> : vector<32xf32>
    %32 = vector.multi_reduction <add>, %31, %cst_23 [0] : vector<16x32xf32> to vector<32xf32>
    %33 = vector.shape_cast %32 : vector<32xf32> to vector<1x32xf32>
    %cst_24 = arith.constant 6.250000e-02 : f32
    %34 = vector.broadcast %cst_24 : f32 to vector<1x32xf32>
    %35 = arith.mulf %33, %34 : vector<1x32xf32>
    %36 = arith.mulf %30, %30 : vector<1x32xf32>
    %37 = arith.subf %35, %36 : vector<1x32xf32>
    %cst_25 = arith.constant 0.000000e+00 : f32
    %38 = vector.broadcast %cst_25 : f32 to vector<1x32xf32>
    %39 = arith.maximumf %37, %38 : vector<1x32xf32>
    %40 = vector.broadcast %30 : vector<1x32xf32> to vector<16x32xf32>
    %41 = arith.subf %24, %40 : vector<16x32xf32>
    %cst_26 = arith.constant 9.99999974E-6 : f32
    %42 = vector.broadcast %cst_26 : f32 to vector<1x32xf32>
    %43 = arith.addf %39, %42 : vector<1x32xf32>
    %44 = math.rsqrt %43 : vector<1x32xf32>
    %45 = vector.broadcast %44 : vector<1x32xf32> to vector<16x32xf32>
    %46 = arith.mulf %41, %45 : vector<16x32xf32>
    %47 = vector.broadcast %25 : vector<1x32xf32> to vector<16x32xf32>
    %48 = arith.mulf %46, %47 : vector<16x32xf32>
    %49 = vector.broadcast %26 : vector<1x32xf32> to vector<16x32xf32>
    %50 = arith.addf %48, %49 : vector<16x32xf32>
    %cst_27 = arith.constant 0.000000e+00 : f32
    %51 = vector.broadcast %cst_27 : f32 to vector<16x32xf32>
    %52 = arith.maximumf %50, %51 : vector<16x32xf32>
    %c0_28 = arith.constant 0 : index
    %c0_29 = arith.constant 0 : index
    %53 = vector.load %arg11[%c0_28, %c0_29] : memref<32x32xf32, #tpu.memory_space<vmem>>, vector<32x32xf32>
    %cst_30 = arith.constant dense<0.000000e+00> : vector<16x32xf32>
    %54 = tpu.matmul %52, %53, %cst_30 {dimension_numbers = #tpu.dot_dimension_numbers<[1], [0], [0], [1], [0, 0, 1, 1], [], []>} : vector<16x32xf32>, vector<32x32xf32>, vector<16x32xf32> -> vector<16x32xf32>
    %c0_31 = arith.constant 0 : index
    %c0_32 = arith.constant 0 : index
    %55 = vector.load %arg12[%c0_31, %c0_32] : memref<1x32xf32, #tpu.memory_space<vmem>>, vector<1x32xf32>
    %c0_33 = arith.constant 0 : index
    %c0_34 = arith.constant 0 : index
    %56 = vector.load %arg13[%c0_33, %c0_34] : memref<1x32xf32, #tpu.memory_space<vmem>>, vector<1x32xf32>
    %cst_35 = arith.constant dense<0.000000e+00> : vector<32xf32>
    %57 = vector.multi_reduction <add>, %54, %cst_35 [0] : vector<16x32xf32> to vector<32xf32>
    %58 = vector.shape_cast %57 : vector<32xf32> to vector<1x32xf32>
    %cst_36 = arith.constant 6.250000e-02 : f32
    %59 = vector.broadcast %cst_36 : f32 to vector<1x32xf32>
    %60 = arith.mulf %58, %59 : vector<1x32xf32>
    %61 = arith.mulf %54, %54 : vector<16x32xf32>
    %cst_37 = arith.constant dense<0.000000e+00> : vector<32xf32>
    %62 = vector.multi_reduction <add>, %61, %cst_37 [0] : vector<16x32xf32> to vector<32xf32>
    %63 = vector.shape_cast %62 : vector<32xf32> to vector<1x32xf32>
    %cst_38 = arith.constant 6.250000e-02 : f32
    %64 = vector.broadcast %cst_38 : f32 to vector<1x32xf32>
    %65 = arith.mulf %63, %64 : vector<1x32xf32>
    %66 = arith.mulf %60, %60 : vector<1x32xf32>
    %67 = arith.subf %65, %66 : vector<1x32xf32>
    %cst_39 = arith.constant 0.000000e+00 : f32
    %68 = vector.broadcast %cst_39 : f32 to vector<1x32xf32>
    %69 = arith.maximumf %67, %68 : vector<1x32xf32>
    %70 = vector.broadcast %60 : vector<1x32xf32> to vector<16x32xf32>
    %71 = arith.subf %54, %70 : vector<16x32xf32>
    %cst_40 = arith.constant 9.99999974E-6 : f32
    %72 = vector.broadcast %cst_40 : f32 to vector<1x32xf32>
    %73 = arith.addf %69, %72 : vector<1x32xf32>
    %74 = math.rsqrt %73 : vector<1x32xf32>
    %75 = vector.broadcast %74 : vector<1x32xf32> to vector<16x32xf32>
    %76 = arith.mulf %71, %75 : vector<16x32xf32>
    %77 = vector.broadcast %55 : vector<1x32xf32> to vector<16x32xf32>
    %78 = arith.mulf %76, %77 : vector<16x32xf32>
    %79 = vector.broadcast %56 : vector<1x32xf32> to vector<16x32xf32>
    %80 = arith.addf %78, %79 : vector<16x32xf32>
    %cst_41 = arith.constant 0.000000e+00 : f32
    %81 = vector.broadcast %cst_41 : f32 to vector<16x32xf32>
    %82 = arith.maximumf %80, %81 : vector<16x32xf32>
    %c0_42 = arith.constant 0 : index
    %c0_43 = arith.constant 0 : index
    %83 = vector.load %arg14[%c0_42, %c0_43] : memref<32x128xf32, #tpu.memory_space<vmem>>, vector<32x128xf32>
    %cst_44 = arith.constant dense<0.000000e+00> : vector<16x128xf32>
    %84 = tpu.matmul %82, %83, %cst_44 {dimension_numbers = #tpu.dot_dimension_numbers<[1], [0], [0], [1], [0, 0, 1, 1], [], []>} : vector<16x32xf32>, vector<32x128xf32>, vector<16x128xf32> -> vector<16x128xf32>
    %c0_45 = arith.constant 0 : index
    %c0_46 = arith.constant 0 : index
    %85 = vector.load %arg15[%c0_45, %c0_46] : memref<1x128xf32, #tpu.memory_space<vmem>>, vector<1x128xf32>
    %86 = vector.broadcast %85 : vector<1x128xf32> to vector<16x128xf32>
    %87 = arith.addf %84, %86 : vector<16x128xf32>
    %cst_47 = arith.constant 0.000000e+00 : f32
    %88 = vector.broadcast %cst_47 : f32 to vector<16x128xf32>
    %89 = arith.maximumf %87, %88 : vector<16x128xf32>
    %c0_48 = arith.constant 0 : index
    %c0_49 = arith.constant 0 : index
    %90 = vector.load %arg16[%c0_48, %c0_49] : memref<16x128xf32, #tpu.memory_space<vmem>>, vector<16x128xf32>
    tpu.vector_store %arg16[%c0_48, %c0_49], %89 {strides = array<i32>} : memref<16x128xf32, #tpu.memory_space<vmem>>, vector<16x128xf32>,
    return
  }
  func.func @transform_0(%arg0: i32) -> (i32, i32) {
    %c0_i32 = arith.constant 0 : i32
    %c0_i32_0 = arith.constant 0 : i32
    %c0_i32_1 = arith.constant 0 : i32
    return %c0_i32, %c0_i32_0 : i32, i32
  }
  func.func @transform_1(%arg0: i32) -> (i32, i32) {
    %c0_i32 = arith.constant 0 : i32
    %c0_i32_0 = arith.constant 0 : i32
    %c0_i32_1 = arith.constant 0 : i32
    return %c0_i32, %c0_i32_0 : i32, i32
  }
  func.func @transform_2(%arg0: i32) -> (i32, i32) {
    %c0_i32 = arith.constant 0 : i32
    %c0_i32_0 = arith.constant 0 : i32
    %c0_i32_1 = arith.constant 0 : i32
    return %c0_i32, %c0_i32_0 : i32, i32
  }
  func.func @transform_3(%arg0: i32) -> (i32, i32) {
    %c0_i32 = arith.constant 0 : i32
    %c0_i32_0 = arith.constant 0 : i32
    %c0_i32_1 = arith.constant 0 : i32
    return %c0_i32, %c0_i32_0 : i32, i32
  }
  func.func @transform_4(%arg0: i32) -> (i32, i32) {
    %c0_i32 = arith.constant 0 : i32
    %c0_i32_0 = arith.constant 0 : i32
    %c0_i32_1 = arith.constant 0 : i32
    return %c0_i32, %c0_i32_0 : i32, i32
  }
  func.func @transform_5(%arg0: i32) -> (i32, i32) {
    %c0_i32 = arith.constant 0 : i32
    %c0_i32_0 = arith.constant 0 : i32
    %c0_i32_1 = arith.constant 0 : i32
    return %c0_i32, %c0_i32_0 : i32, i32
  }
  func.func @transform_6(%arg0: i32) -> (i32, i32) {
    %c0_i32 = arith.constant 0 : i32
    %c0_i32_0 = arith.constant 0 : i32
    %c0_i32_1 = arith.constant 0 : i32
    return %c0_i32, %c0_i32_0 : i32, i32
  }
  func.func @transform_7(%arg0: i32) -> (i32, i32) {
    %c0_i32 = arith.constant 0 : i32
    %c0_i32_0 = arith.constant 0 : i32
    %c0_i32_1 = arith.constant 0 : i32
    return %c0_i32, %c0_i32_0 : i32, i32
  }
  func.func @transform_8(%arg0: i32) -> (i32, i32) {
    %c0_i32 = arith.constant 0 : i32
    %c0_i32_0 = arith.constant 0 : i32
    %c0_i32_1 = arith.constant 0 : i32
    return %c0_i32, %c0_i32_0 : i32, i32
  }
  func.func @transform_9(%arg0: i32) -> (i32, i32) {
    %c0_i32 = arith.constant 0 : i32
    %c0_i32_0 = arith.constant 0 : i32
    %c0_i32_1 = arith.constant 0 : i32
    return %c0_i32, %c0_i32_0 : i32, i32
  }
  func.func @transform_10(%arg0: i32) -> (i32, i32) {
    %c0_i32 = arith.constant 0 : i32
    %c0_i32_0 = arith.constant 0 : i32
    %c0_i32_1 = arith.constant 0 : i32
    return %c0_i32, %c0_i32_0 : i32, i32
  }
  func.func @transform_11(%arg0: i32) -> (i32, i32) {
    %c0_i32 = arith.constant 0 : i32
    %c0_i32_0 = arith.constant 0 : i32
    %c0_i32_1 = arith.constant 0 : i32
    return %c0_i32, %c0_i32_0 : i32, i32
  }
  func.func @transform_12(%arg0: i32) -> (i32, i32) {
    %c0_i32 = arith.constant 0 : i32
    %c0_i32_0 = arith.constant 0 : i32
    %c0_i32_1 = arith.constant 0 : i32
    return %c0_i32, %c0_i32_0 : i32, i32
  }
  func.func @transform_13(%arg0: i32) -> (i32, i32) {
    %c0_i32 = arith.constant 0 : i32
    %c0_i32_0 = arith.constant 0 : i32
    %c0_i32_1 = arith.constant 0 : i32
    return %c0_i32, %c0_i32_0 : i32, i32
  }
  func.func @transform_14(%arg0: i32) -> (i32, i32) {
    %c0_i32 = arith.constant 0 : i32
    %c0_i32_0 = arith.constant 0 : i32
    %c0_i32_1 = arith.constant 0 : i32
    return %c0_i32, %c0_i32_0 : i32, i32
  }
  func.func @transform_15(%arg0: i32) -> (i32, i32) {
    %c0_i32 = arith.constant 0 : i32
    %c0_i32_0 = arith.constant 0 : i32
    %c0_i32_1 = arith.constant 0 : i32
    return %c0_i32, %c0_i32_0 : i32, i32
  }
}

</mosaic_0001>

<bundles_post_ra>
// kernel: tpu_custom_call.1
= control target key start
LH: loop header
LB: loop body
LE: loop exit
PB: predicated region body
PF: predicated region fallthrough
CT: control target
= control target key end

     0   :  { %vm62_vm0 = vcmask 64512   ;;  %s908_s0 = inlined_call_operand.vmem [shape: f32[16,8], index: 0, kind: input, shape index: {}]   ;;  %s909_s1 = inlined_call_operand.vmem [shape: f32[16,8], index: 1, kind: input, shape index: {}]   ;;  %s910_s2 = inlined_call_operand.vmem [shape: f32[16,128], index: 2, kind: input, shape index: {}]   ;;  %s911_s3 = inlined_call_operand.vmem [shape: f32[1,8], index: 3, kind: input, shape index: {}]   ;;  %s912_s4 = inlined_call_operand.vmem [shape: f32[1,8], index: 4, kind: input, shape index: {}]   ;;  %s913_s5 = inlined_call_operand.vmem [shape: f32[1,32], index: 5, kind: input, shape index: {}]   ;;  %s914_s6 = inlined_call_operand.vmem [shape: f32[1,32], index: 6, kind: input, shape index: {}]   ;;  %s915_s7 = inlined_call_operand.vmem [shape: f32[128,32], index: 7, kind: input, shape index: {}]   ;;  %s916_s8 = inlined_call_operand.vmem [shape: f32[1,32], index: 8, kind: input, shape index: {}]   ;;  %s917_s9 = inlined_call_operand.vmem [shape: f32[1,32], index: 9, kind: input, shape index: {}]   ;;  %s918_s10 = inlined_call_operand.vmem [shape: f32[32,32], index: 10, kind: input, shape index: {}]   ;;  %s919_s11 = inlined_call_operand.vmem [shape: f32[1,32], index: 11, kind: input, shape index: {}]   ;;  %s920_s12 = inlined_call_operand.vmem [shape: f32[1,32], index: 12, kind: input, shape index: {}]   ;;  %s921_s13 = inlined_call_operand.vmem [shape: f32[32,128], index: 13, kind: input, shape index: {}]   ;;  %s922_s14 = inlined_call_operand.vmem [shape: f32[1,128], index: 14, kind: input, shape index: {}]   ;;  %s923_s15 = inlined_call_operand.hbm [shape: f32[16,128], index: 15, kind: output, shape index: {}]  }
   0x1   :  { %v108_v0 = vld [vmem:[%s915_s7] sm:$0xff]  ;;  %v109_v1 = vld [vmem:[%s915_s7 + $0x8] sm:$0xff]  ;;  %v110_v2 = vld [vmem:[%s915_s7 + $0x10] sm:$0xff] }
   0x2   :  { %v601_v3 = vpack.c.bf16 %v109_v1, %v108_v0  ;;  %v111_v4 = vld [vmem:[%s915_s7 + $0x18] sm:$0xff]  ;;  %v112_v6 = vld [vmem:[%s915_s7 + $0x20] sm:$0xff]  ;;  %v113_v7 = vld [vmem:[%s915_s7 + $0x28] sm:$0xff] }
   0x3   :  { %v605_v5 = vpack.c.bf16 %v111_v4, %v110_v2  ;;  %v609_v8 = vpack.c.bf16 %v113_v7, %v112_v6  ;;  %v114_v9 = vld [vmem:[%s915_s7 + $0x30] sm:$0xff]  ;;  %v115_v10 = vld [vmem:[%s915_s7 + $0x38] sm:$0xff]  ;;  %v106_v11 = vld [vmem:[%s910_s2] sm:$0xff] }
   0x4   :  { %602 = vmatprep.subr.bf16.mxu0 %v601_v3  ;;  %576 = vmatprep.mubr.f32.mxu0 %v106_v11  ;;  %v69_v12 = vld [vmem:[%s909_s1] sm:$0xff]  ;;  %v70_v17 = vld [vmem:[%s909_s1 + $0x8] sm:$0xff] }
   0x5   :  { %604 = vmatpush3.bf16.msra.mxu0 %v601_v3  ;;  %v502_v13 = vld [vmem:[%s912_s4] ss:$0 sm:$0xff]  ;;  %v52_v18 = vld [vmem:[%s908_s0 + $0x8] sm:$0xff] }
   0x6   :  { %606 = vmatprep.subr.bf16.mxu0 %v605_v5  ;;  %v51_v14 = vld [vmem:[%s908_s0] sm:$0xff]  ;;  %v78_v15 = vmul.f32 %v502_v13, %v69_v12  ;;  %v79_v20 = vmul.f32 %v502_v13, %v70_v17 }
   0x7   :  { %v501_v16 = vld [vmem:[%s911_s3] ss:$0 sm:$0xff] }
   0x8   :  { %v60_v19 = vmul.f32 %v501_v16, %v51_v14  ;;  %v61_v21 = vmul.f32 %v501_v16, %v52_v18 }
   0x9   :  { %608 = vmatpush3.bf16.msra.mxu0 %v605_v5 }
   0xa   :  { %20 = vsyncpa [#allocation3], 0  ;;  %610 = vmatprep.subr.bf16.mxu0 %v609_v8  ;;  %v613_v22 = vpack.c.bf16 %v115_v10, %v114_v9  ;;  %v80_v23 = vsel %vm62_vm0, %v78_v15, 0.0  ;;  %v116_v24 = vld [vmem:[%s915_s7 + $0x40] sm:$0xff]  ;;  %v117_v25 = vld [vmem:[%s915_s7 + $0x48] sm:$0xff]  ;;  %v63_v26 = vsel %vm62_vm0, %v60_v19, 0.0 }
   0xb   :  { %81 = vadd.xlane.f32.xlu1 %v80_v23  ;;  %64 = vadd.xlane.f32.xlu0 %v63_v26  ;;  %v83_v27 = vsel %vm62_vm0, %v79_v20, 0.0  ;;  %v66_v28 = vsel %vm62_vm0, %v61_v21, 0.0  ;;  %v617_v29 = vpack.c.bf16 %v117_v25, %v116_v24  ;;  %v118_v30 = vld [vmem:[%s915_s7 + $0x50] sm:$0xff]  ;;  %v119_v31 = vld [vmem:[%s915_s7 + $0x58] sm:$0xff]  ;;  %v120_v33 = vld [vmem:[%s915_s7 + $0x60] sm:$0xff]  ;;  %vm203_vm1 = vcmask 261120  }
   0xc   :  { %v621_v32 = vpack.c.bf16 %v119_v31, %v118_v30  ;;  %v121_v34 = vld [vmem:[%s915_s7 + $0x68] sm:$0xff]  ;;  %v122_v36 = vld [vmem:[%s915_s7 + $0x70] sm:$0xff]  ;;  %v123_v37 = vld [vmem:[%s915_s7 + $0x78] sm:$0xff] }
   0xd   :  { %612 = vmatpush3.bf16.msra.mxu0 %v609_v8  ;;  %v625_v35 = vpack.c.bf16 %v121_v34, %v120_v33  ;;  %v629_v38 = vpack.c.bf16 %v123_v37, %v122_v36  ;;  %v107_v39 = vld [vmem:[%s910_s2 + $0x8] sm:$0xff]  ;;  %v253_v40 = vld [vmem:[%s918_s10] sm:$0xff]  ;;  %v255_v42 = vld [vmem:[%s918_s10 + $0x10] sm:$0xff] }
   0xe   :  { %614 = vmatprep.subr.bf16.mxu0 %v613_v22  ;;  %v254_v41 = vld [vmem:[%s918_s10 + $0x8] sm:$0xff]  ;;  %v256_v44 = vld [vmem:[%s918_s10 + $0x18] sm:$0xff]  ;;  %v504_v50 = vld [vmem:[%s914_s6] ss:$0 sm:$0xff] }
   0xf   :  { %84 = vadd.xlane.f32.xlu1 %v83_v27  ;;  %67 = vadd.xlane.f32.xlu0 %v66_v28  ;;  %v633_v43 = vpack.c.bf16 %v254_v41, %v253_v40  ;;  %v637_v45 = vpack.c.bf16 %v256_v44, %v255_v42  ;;  %v503_v51 = vld [vmem:[%s913_s5] ss:$0 sm:$0xff]  ;;  %v391_v40 = vld [vmem:[%s921_s13 + $0x10] sm:$0xff]  ;;  %v392_v41 = vld [vmem:[%s921_s13 + $0x18] sm:$0xff] }
  0x10   :  { %v505_v27 = vld [vmem:[%s916_s8] ss:$0 sm:$0xff]  ;;  %v645_v42 = vpack.c.bf16 %v392_v41, %v391_v40 }
  0x11   :  { %616 = vmatpush3.bf16.msra.mxu0 %v613_v22  ;;  %634 = vmatprep.subr.bf16.mxu1 %v633_v43  ;;  %v506_v30 = vld [vmem:[%s917_s9] ss:$0 sm:$0xff] }
  0x12   :  { %618 = vmatprep.subr.bf16.mxu0 %v617_v29  ;;  %636 = vmatpush3.bf16.msra.mxu1 %v633_v43  ;;  %v389_v37 = vld [vmem:[%s921_s13] sm:$0xff] }
  0x13   :  { %638 = vmatprep.subr.bf16.mxu1 %v637_v45 }
  0x15   :  { %620 = vmatpush3.bf16.msra.mxu0 %v617_v29 }
  0x16   :  { %622 = vmatprep.subr.bf16.mxu0 %v621_v32  ;;  %640 = vmatpush3.bf16.msra.mxu1 %v637_v45 }
  0x19   :  { %624 = vmatpush3.bf16.msra.mxu0 %v621_v32 }
  0x1a   :  { %626 = vmatprep.subr.bf16.mxu0 %v625_v35 }
  0x1d   :  { %628 = vmatpush3.bf16.msra.mxu0 %v625_v35 }
  0x1e   :  { %630 = vmatprep.subr.bf16.mxu0 %v629_v38 }
  0x21   :  { %632 = vmatpush3.bf16.msra.mxu0 %v629_v38  ;;  %v390_v38 = vld [vmem:[%s921_s13 + $0x8] sm:$0xff] }
  0x24   :  { %577 = vmatmul.mubr.f32.vlgmr.msra.gmra.mrb[0].mxu0 %v107_v39  ;;  %v641_v39 = vpack.c.bf16 %v390_v38, %v389_v37 }
  0x26   :  { %642 = vmatprep.subr.bf16.mxu1 %v641_v39 }
  0x98   :  { %v82_v46 = vpop.xlane.xlu1 %81  ;;  %v65_v47 = vpop.xlane.xlu0 %64 }
  0x99   :  { %v102_v54 = vmul.f32 %v504_v50, %v82_v46  ;;  %v93_v55 = vmul.f32 %v503_v51, %v65_v47 }
  0x9b   :  { %v104_v58 = vadd.f32 %v102_v54, %v93_v55 }
  0x9c   :  { %v85_v48 = vpop.xlane.xlu1 %84  ;;  %v68_v49 = vpop.xlane.xlu0 %67 }
  0x9d   :  { %v103_v52 = vmul.f32 %v504_v50, %v85_v48  ;;  %v94_v53 = vmul.f32 %v503_v51, %v68_v49 }
  0x9f   :  { %v105_v56 = vadd.f32 %v103_v52, %v94_v53 }
  0xf7   :  { %v578_v57 = vpop.f32.mrb[0].mxu0 }
  0xf8   :  { %v200_v59 = vadd.f32 %v578_v57, %v105_v56  ;;  %v190_v60 = vpop.f32.mrb[1].mxu0 }
  0xf9   :  { %v199_v61 = vadd.f32 %v190_v60, %v104_v58 }
  0xfa   :  { %v205_v62 = vsel %vm203_vm1, %v200_v59, 0.0  ;;  %v215_v63 = vmul.f32 %v200_v59, %v200_v59 }
  0xfb   :  { %v204_v0 = vsel %vm203_vm1, %v199_v61, 0.0  ;;  %v214_v1 = vmul.f32 %v199_v61, %v199_v61 }
  0xfc   :  { %v217_v2 = vsel %vm203_vm1, %v215_v63, 0.0  ;;  %v206_v3 = vadd.f32 %v205_v62, %v204_v0 }
  0xfd   :  { %v216_v4 = vsel %vm203_vm1, %v214_v1, 0.0 }
  0xfe   :  { %v207_v5 = vrot.slane %v206_v3, 4  ;;  %v218_v6 = vadd.f32 %v217_v2, %v216_v4 }
 0x100   :  { %v208_v7 = vadd.f32 %v207_v5, %v206_v3  ;;  %v219_v8 = vrot.slane %v218_v6, 4 }
 0x102   :  { %v209_v9 = vrot.slane %v208_v7, 2  ;;  %v220_v10 = vadd.f32 %v219_v8, %v218_v6 }
 0x104   :  { %v210_v11 = vadd.f32 %v209_v9, %v208_v7  ;;  %v221_v12 = vrot.slane %v220_v10, 2 }
 0x106   :  { %v211_v13 = vrot.slane %v210_v11, 1  ;;  %v222_v14 = vadd.f32 %v221_v12, %v220_v10  ;;  %v509_v10 = vld [vmem:[%s919_s11] ss:$0 sm:$0xff]  ;;  %s680_s11 = smov [#allocation2]  }
 0x107   :  { %s490_s3 = sshll.u32 %s680_s11, 4  ;;  %s491_s3 = int_to_ptr.vmem [resolvable:$true] %s490_s3 }
 0x108   :  { %v212_v15 = vadd.f32 %v211_v13, %v210_v11  ;;  %v223_v16 = vrot.slane %v222_v14, 1  ;;  %v510_v13 = vld [vmem:[%s920_s12] ss:$0 sm:$0xff]  ;;  %s656_s12 = scalar_lea.vmem %s491_s3, 256  ;;  %p661_p1 = scmp.lt.s32.totalorder %s491_s3, %s491_s3 }
 0x109   :  { %p657_p0 = scmp.ne.s32.totalorder %s491_s3, %s656_s12  ;;  %p662_p2 = scmp.lt.s32.totalorder %s656_s12, %s656_s12 }
 0x10a   :  { %v213_v17 = vmul.f32 0.0625, %v212_v15  ;;  %v224_v18 = vadd.f32 %v223_v16, %v222_v14 }
 0x10b   :  { %p663_p3 = por %p662_p2, %p661_p1 }
 0x10c   :  { %v225_v19 = vmul.f32 0.0625, %v224_v18  ;;  %v226_v20 = vmul.f32 %v213_v17, %v213_v17  ;;  %v229_v21 = vsub.f32 %v199_v61, %v213_v17  ;;  %v230_v22 = vsub.f32 %v200_v59, %v213_v17 }
 0x10d   :  { %p664_p4 = pnand %p663_p3, %p657_p0 }
 0x10e   :  { %v227_v23 = vsub.f32 %v225_v19, %v226_v20  ;;  %v511_v20 = vld [vmem:[%s922_s14] ss:$0 sm:$0xff] }
 0x110   :  { %v228_v24 = vmax.f32 %v227_v23, 0.0 }
 0x112   :  { %v231_v25 = vadd.f32 1e-05, %v228_v24 }
 0x114   :  { %652 = vrsqrt.f32 %v231_v25 }
 0x11e   :  { %v653_v26 = vpop.eup %652 }
 0x11f   :  { %v233_v28 = vmul.f32 %v653_v26, %v229_v21  ;;  %v234_v29 = vmul.f32 %v653_v26, %v230_v22 }
 0x121   :  { %v241_v31 = vmul.f32 %v505_v27, %v233_v28  ;;  %v242_v32 = vmul.f32 %v505_v27, %v234_v29 }
 0x123   :  { %v249_v33 = vadd.f32 %v506_v30, %v241_v31  ;;  %v250_v34 = vadd.f32 %v506_v30, %v242_v32 }
 0x125   :  { %v251_v35 = vmax.f32 %v249_v33, 0.0  ;;  %v252_v36 = vmax.f32 %v250_v34, 0.0 }
 0x127   :  { %587 = vmatprep.mubr.msk.f32.mxu1 %vm203_vm1, %v251_v35 }
 0x128   :  { %588 = vmatmul.mubr.msk.f32.vlgmr.msra.gmra.mrb[0].mxu1 %vm203_vm1, %v252_v36 }
 0x129   :  { %644 = vmatpush3.bf16.msra.mxu1 %v641_v39 }
 0x12a   :  { %646 = vmatprep.subr.bf16.mxu1 %v645_v42 }
 0x12d   :  { %648 = vmatpush3.bf16.msra.mxu1 %v645_v42 }
 0x1fb   :  { %v589_v43 = vpop.f32.mrb[0].mxu1 }
 0x1fc   :  { %v341_v44 = vsel %vm203_vm1, %v589_v43, 0.0  ;;  %v351_v45 = vmul.f32 %v589_v43, %v589_v43  ;;  %v329_v46 = vpop.f32.mrb[1].mxu1 }
 0x1fd   :  { %v340_v47 = vsel %vm203_vm1, %v329_v46, 0.0  ;;  %v350_v48 = vmul.f32 %v329_v46, %v329_v46 }
 0x1fe   :  { %v353_v49 = vsel %vm203_vm1, %v351_v45, 0.0  ;;  %v342_v50 = vadd.f32 %v341_v44, %v340_v47 }
 0x1ff   :  { %v352_v51 = vsel %vm203_vm1, %v350_v48, 0.0 }
 0x200   :  { %v343_v52 = vrot.slane %v342_v50, 4  ;;  %v354_v53 = vadd.f32 %v353_v49, %v352_v51 }
 0x202   :  { %v344_v54 = vadd.f32 %v343_v52, %v342_v50  ;;  %v355_v55 = vrot.slane %v354_v53, 4 }
 0x204   :  { %v345_v56 = vrot.slane %v344_v54, 2  ;;  %v356_v57 = vadd.f32 %v355_v55, %v354_v53 }
 0x206   :  { %v346_v58 = vadd.f32 %v345_v56, %v344_v54  ;;  %v357_v59 = vrot.slane %v356_v57, 2 }
 0x208   :  { %v347_v60 = vrot.slane %v346_v58, 1  ;;  %v358_v61 = vadd.f32 %v357_v59, %v356_v57 }
 0x20a   :  { %v348_v62 = vadd.f32 %v347_v60, %v346_v58  ;;  %v359_v63 = vrot.slane %v358_v61, 1 }
 0x20c   :  { %v349_v0 = vmul.f32 0.0625, %v348_v62  ;;  %v360_v1 = vadd.f32 %v359_v63, %v358_v61 }
 0x20e   :  { %v361_v2 = vmul.f32 0.0625, %v360_v1  ;;  %v362_v3 = vmul.f32 %v349_v0, %v349_v0  ;;  %v365_v4 = vsub.f32 %v329_v46, %v349_v0  ;;  %v366_v5 = vsub.f32 %v589_v43, %v349_v0 }
 0x210   :  { %v363_v6 = vsub.f32 %v361_v2, %v362_v3 }
 0x212   :  { %v364_v7 = vmax.f32 %v363_v6, 0.0 }
 0x214   :  { %v367_v8 = vadd.f32 1e-05, %v364_v7 }
 0x216   :  { %654 = vrsqrt.f32 %v367_v8 }
 0x220   :  { %v655_v9 = vpop.eup %654 }
 0x221   :  { %v369_v11 = vmul.f32 %v655_v9, %v365_v4  ;;  %v370_v12 = vmul.f32 %v655_v9, %v366_v5 }
 0x223   :  { %v377_v14 = vmul.f32 %v509_v10, %v369_v11  ;;  %v378_v15 = vmul.f32 %v509_v10, %v370_v12 }
 0x225   :  { %v385_v16 = vadd.f32 %v510_v13, %v377_v14  ;;  %v386_v17 = vadd.f32 %v510_v13, %v378_v15 }
 0x227   :  { %v387_v18 = vmax.f32 %v385_v16, 0.0  ;;  %v388_v19 = vmax.f32 %v386_v17, 0.0 }
 0x229   :  { %598 = vmatprep.mubr.msk.f32.mxu1 %vm203_vm1, %v387_v18 }
 0x22a   :  { %599 = vmatmul.mubr.msk.f32.vlgmr.msra.gmra.mrb[2].mxu1 %vm203_vm1, %v388_v19 }
 0x2fd   :  { %v600_v21 = vpop.f32.mrb[2].mxu1 }
 0x2fe   :  { %v478_v22 = vadd.f32 %v600_v21, %v511_v20  ;;  %v472_v23 = vpop.f32.mrb[3].mxu1 }
 0x2ff   :  { %v473_v24 = vadd.f32 %v511_v20, %v472_v23 }
 0x300   :  { %v482_v25 = vmax.f32 %v478_v22, 0.0 }
 0x301   :  { %v481_v26 = vmax.f32 %v473_v24, 0.0 }
 0x302   :  { %484 = vst [vmem:[#allocation2 + $0x8] sm:$0xff] %v482_v25 }
 0x303   :  { %483 = vst [vmem:[#allocation2] sm:$0xff] %v481_v26 }
 0x304   :  { %667 = shalt.err (!%p664_p4)
}
 0x305   :  { %s668_s19 = scalar_lea.hbm %s923_s15, 256 }
 0x306   :  { %p669_p5 = scmp.ne.s32.totalorder %s923_s15, %s668_s19  ;;  %p672_p6 = scmp.lt.u32.totalorder %s668_s19, %s923_s15 }
 0x308   :  { %p674_p7 = pnand %p672_p6, %p669_p5 }
 0x30a   :  { %677 = shalt.err (!%p674_p7)
}
 0x30b   :  { %s681_s21 = smov 128   ;;  %s682_s22 = smov 8  }
 0x30c   :  { %496 = dma.vmem_to_hbm [thread:$0]  %s491_s3, 256, %s923_s15, [#allocation3], %s681_s21, %s681_s21, %s682_s22  }
 0x30d   :  { %678 = dma.done.wait [#allocation3], 256  }
 0x30e   :  { %679 = vsyncadd [#allocation3], 4294967040 }
 0x30f   :  { %500 = vsyncpa [#allocation3], 1 }

</bundles_post_ra>
